<compile_context>
chip_gen: v7x
topology: tpu7x:2x2x1
jax: 0.10.0
libtpu: 0.0.40
codegen_flags: <defaults>
</compile_context>

<pallas_src>
import numpy as np
import jax
import jax.numpy as jnp
from jax.experimental import pallas as pl
from jax.experimental.pallas import tpu as pltpu


def _round_up(n, m):
    return (n + m - 1) // m * m


def _pick_lane_tile(total, cap):
    """Largest multiple-of-128 divisor of `total` (a multiple of 128) that is <= cap."""
    m = total // 128
    best = 1
    for d in range(1, m + 1):
        if m % d == 0 and d * 128 <= cap:
            best = d
    return best * 128


def _pick_batch_tile(batch, cap):
    """Largest batch tile (multiple of 8) keeping padding small; falls back to 8."""
    cands = [c for c in (256, 128, 64, 32, 16, 8) if c <= max(8, cap)]
    if not cands:
        cands = [8]
    tb = cands[-1]
    for c in cands:  # largest first
        bp = _round_up(batch, c)
        if bp - batch <= max(bp // 8, 7):  # allow ~12.5% padded rows
            tb = c
            break
    return tb


def relukan_forward(x, phase_low, phase_height, w_conv, b_conv, g, k,
                    *, matmul_dtype=jnp.bfloat16, tb=256, to=512):
    """Pallas implementation of ReLUKANLayer.forward.

    x:            (B, input_size) f32
    phase_low:    (input_size, g+k) f32
    phase_height: (input_size, g+k) f32
    w_conv:       (output_size, 1, g+k, input_size) f32  (PyTorch OIHW conv weight)
    b_conv:       (output_size,) f32
    returns:      (B, output_size) f32
    """
    B, In = x.shape
    G = g + k
    O = w_conv.shape[0]
    r = 4.0 * g * g / ((k + 1) * (k + 1))
    f32 = jnp.float32

    # ---- padded sizes ----
    In_pad = _round_up(In, 128)          # lane-aligned input features
    O_pad = _round_up(O, 128)            # lane-dense output
    F_pad = In_pad * G                   # contraction dim (multiple of 128)
    w_bytes = jnp.dtype(matmul_dtype).itemsize

    # ---- VMEM-aware / generation-aware tile selection ----
    try:
        vmem_cap = int(pltpu.get_tpu_info().vmem_capacity_bytes)   # 64 MiB v7x, 128 MiB v5e/v6e
    except Exception:
        vmem_cap = 64 * 1024 * 1024                                 # conservative fallback
    budget = int(vmem_cap * 0.80)

    def vmem_est(TB_, TO_, wbuf_):
        return (2 * TB_ * In_pad * 4            # x (double-buffered)
                + 4 * F_pad * 4                 # phase_low/high (2 bufs each)
                + wbuf_ * F_pad * TO_ * w_bytes # weights
                + 2 * TO_ * 4                   # bias
                + 2 * TB_ * TO_ * 4             # output (double-buffered)
                + TB_ * F_pad * w_bytes         # basis scratch
                + 4 * TB_ * In_pad * 4)         # per-slab f32 intermediates (slack)

    TB = _pick_batch_tile(B, tb)
    TO = _pick_lane_tile(O_pad, max(128, to))
    # Full-O residency kills inner-axis weight streaming entirely when it fits.
    if vmem_est(TB, O_pad, 2) <= budget:
        TO = O_pad

    def wbuf_for(TO_):
        return 3 if (O_pad // TO_) > 1 else 2

    # Shrink tiles (not just the limit) if over budget.
    while vmem_est(TB, TO, wbuf_for(TO)) > budget and (TO > 128 or TB > 8):
        if TO > 128:
            TO = _pick_lane_tile(O_pad, max(128, TO // 2))
        else:
            TB = max(8, TB // 2)

    B_pad = _round_up(B, TB)
    n_b, n_o = B_pad // TB, O_pad // TO
    grid = (n_b, n_o)                    # batch outer ("parallel"), o inner ("arbitrary")

    est = vmem_est(TB, TO, wbuf_for(TO))
    vmem_limit = int(min(budget, max(int(est * 1.5), 32 * 1024 * 1024)))
    vmem_limit = max(vmem_limit, min(budget, est))

    # ---- host-side parameter plumbing (layout only) ----
    # h-major flat layout over (G, In_pad): position q = h*In_pad + i holds feature (i, h).
    low_h = jnp.pad(phase_low.astype(f32).T, ((0, 0), (0, In_pad - In))).reshape(1, F_pad)
    high_h = jnp.pad(phase_height.astype(f32).T, ((0, 0), (0, In_pad - In))).reshape(1, F_pad)

    # PyTorch pairs basis[b, i, h] with w_conv.reshape(O, In, G)[o, i, h]
    # (flat reinterpretation of the (B, In, G) -> (B, 1, G, In) reshape).
    w_m = w_conv.astype(f32).reshape(O, In, G)            # exact flat pairing
    w_m = jnp.transpose(w_m, (0, 2, 1))                   # (O, G, In): h-major
    w_m = jnp.pad(w_m, ((0, 0), (0, 0), (0, In_pad - In)))
    w_m = w_m.reshape(O, F_pad) * np.float32(r * r)       # fold r^2 into weights
    w_m = jnp.pad(w_m, ((0, O_pad - O), (0, 0)))
    w_m = w_m.T.astype(matmul_dtype)                      # (F_pad, O_pad)

    b_row = jnp.pad(b_conv.astype(f32), (0, O_pad - O)).reshape(1, O_pad)
    x_p = jnp.pad(x.astype(f32), ((0, B_pad - B), (0, In_pad - In)))

    # ---- kernel ----
    def kernel(x_ref, low_ref, high_ref, w_ref, b_ref, o_ref, basis_ref):
        # Build the basis once per batch tile (o == 0), slab-by-slab over h.
        @pl.when(pl.program_id(1) == 0)
        def _build_basis():
            xv = x_ref[...]                                # (TB, In_pad) f32
            for h in range(G):                             # static, fully unrolled; G small
                s0, s1 = h * In_pad, (h + 1) * In_pad
                lo = low_ref[:, s0:s1]                     # (1, In_pad)
                hi = high_ref[:, s0:s1]
                x1 = jnp.maximum(xv - lo, 0.0)
                x2 = jnp.maximum(hi - xv, 0.0)
                t = x1 * x2
                basis_ref[:, s0:s1] = (t * t).astype(basis_ref.dtype)

        # One MXU matmul per output tile; f32 accumulate; r^2 already folded in w.
        out = jnp.dot(basis_ref[...], w_ref[...],
                      preferred_element_type=jnp.float32)  # (TB, TO)
        o_ref[...] = (out + b_ref[...]).astype(o_ref.dtype)

    # ---- specs ----
    w_idx = lambda b, o: (0, o)
    if n_o > 1:
        try:
            w_spec = pl.BlockSpec((F_pad, TO), w_idx, pipeline_mode=pl.Buffered(3))
        except Exception:
            w_spec = pl.BlockSpec((F_pad, TO), w_idx)
    else:
        w_spec = pl.BlockSpec((F_pad, TO), w_idx)

    grid_spec = pltpu.PrefetchScalarGridSpec(
        num_scalar_prefetch=0,
        grid=grid,
        in_specs=[
            pl.BlockSpec((TB, In_pad), lambda b, o: (b, 0)),   # x (constant along o)
            pl.BlockSpec((1, F_pad), lambda b, o: (0, 0)),     # phase_low  (resident)
            pl.BlockSpec((1, F_pad), lambda b, o: (0, 0)),     # phase_high (resident)
            w_spec,                                            # weights (streamed along o)
            pl.BlockSpec((1, TO), lambda b, o: (0, o)),        # bias
        ],
        out_specs=pl.BlockSpec((TB, TO), lambda b, o: (b, o)),
        scratch_shapes=[pltpu.VMEM((TB, F_pad), matmul_dtype)],  # cached basis
    )

    out = pl.pallas_call(
        kernel,
        out_shape=jax.ShapeDtypeStruct((B_pad, O_pad), jnp.float32),
        grid_spec=grid_spec,
        compiler_params=pltpu.CompilerParams(
            dimension_semantics=("parallel", "arbitrary"),
            vmem_limit_bytes=vmem_limit),
    )(x_p, low_h, high_h, w_m, b_row)
    return out[:B, :O]


if __name__ == "__main__":
    # Small shapes consistent with the module.
    input_size, g, k, output_size = 8, 4, 2, 16
    batch = 8
    G = g + k
    r = 4.0 * g * g / ((k + 1) * (k + 1))

    # Deterministic parameter init (same construction as the module's __init__).
    phase_low_np = np.arange(-k, g) / g                    # (G,)
    phase_height_np = phase_low_np + (k + 1) / g
    phase_low = jnp.asarray(np.tile(phase_low_np, (input_size, 1)), dtype=jnp.float32)
    phase_height = jnp.asarray(np.tile(phase_height_np, (input_size, 1)), dtype=jnp.float32)

    key = jax.random.PRNGKey(0)
    kx, kw, kb = jax.random.split(key, 3)
    x = jax.random.normal(kx, (batch, input_size), dtype=jnp.float32)
    fan_in = 1 * G * input_size
    bound = 1.0 / np.sqrt(fan_in)
    w_conv = jax.random.uniform(kw, (output_size, 1, G, input_size),
                                minval=-bound, maxval=bound, dtype=jnp.float32)
    b_conv = jax.random.uniform(kb, (output_size,),
                                minval=-bound, maxval=bound, dtype=jnp.float32)

    # Pure-JAX reference replicating the PyTorch semantics exactly.
    xe = x[:, :, None]                                     # (B, In, 1)
    x1 = jnp.maximum(xe - phase_low[None], 0.0)
    x2 = jnp.maximum(phase_height[None] - xe, 0.0)
    basis = (x1 * x2 * r) ** 2                             # (B, In, G)
    basis_r = basis.reshape(batch, 1, G, input_size)       # PyTorch reshape (flat reinterp)
    ref = jnp.einsum("bchw,ochw->bo", basis_r, w_conv) + b_conv

    # f32 matmul path: strict check.
    out_f32 = relukan_forward(x, phase_low, phase_height, w_conv, b_conv, g, k,
                              matmul_dtype=jnp.float32)
    out_f32 = jax.block_until_ready(out_f32)
    np.testing.assert_allclose(np.asarray(out_f32), np.asarray(ref), rtol=1e-4, atol=1e-5)

    # bf16-operand / f32-accumulate path (default for v6e/v7x MXU): looser tolerance.
    out_bf16 = relukan_forward(x, phase_low, phase_height, w_conv, b_conv, g, k,
                               matmul_dtype=jnp.bfloat16)
    out_bf16 = jax.block_until_ready(out_bf16)
    np.testing.assert_allclose(np.asarray(out_bf16), np.asarray(ref), rtol=2e-2, atol=2e-2)

    print("KERNEL_OK")
</pallas_src>

<mosaic_0001>
module attributes {stable_mosaic.version = 11 : i64} {
  func.func @kernel(%arg0: i32, %arg1: i32, %arg2: memref<8x128xf32, #tpu.memory_space<vmem>>, %arg3: memref<1x768xf32, #tpu.memory_space<vmem>>, %arg4: memref<1x768xf32, #tpu.memory_space<vmem>>, %arg5: memref<768x128xf32, #tpu.memory_space<vmem>>, %arg6: memref<1x128xf32, #tpu.memory_space<vmem>>, %arg7: memref<8x128xf32, #tpu.memory_space<vmem>>, %arg8: memref<8x768xf32, #tpu.memory_space<vmem>>) attributes {dimension_semantics = [#tpu.dimension_semantics<parallel>, #tpu.dimension_semantics<arbitrary>], iteration_bounds = array<i64: 1, 1>, scalar_prefetch = 0 : i64, scratch_operands = 1 : i64, tpu.core_type = #tpu.core_type<tc>, window_params = [{transform_indices = @transform_0, window_bounds = array<i64: 8, 128>}, {pipeline_mode = #tpu.pipeline_mode<synchronous>, transform_indices = @transform_1, window_bounds = array<i64: 1, 768>}, {pipeline_mode = #tpu.pipeline_mode<synchronous>, transform_indices = @transform_2, window_bounds = array<i64: 1, 768>}, {transform_indices = @transform_3, window_bounds = array<i64: 768, 128>}, {transform_indices = @transform_4, window_bounds = array<i64: 1, 128>}, {transform_indices = @transform_5, window_bounds = array<i64: 8, 128>}]} {
    %c0_i32 = arith.constant 0 : i32
    %0 = arith.cmpi eq, %arg1, %c0_i32 : i32
    %1 = arith.extui %0 : i1 to i32
    %c0_i32_0 = arith.constant 0 : i32
    %2 = arith.cmpi ne, %1, %c0_i32_0 : i32
    scf.if %2 {
      %c0_8 = arith.constant 0 : index
      %c0_9 = arith.constant 0 : index
      %10 = vector.load %arg2[%c0_8, %c0_9] : memref<8x128xf32, #tpu.memory_space<vmem>>, vector<8x128xf32>
      %c0_10 = arith.constant 0 : index
      %c0_11 = arith.constant 0 : index
      %11 = vector.load %arg3[%c0_10, %c0_11] : memref<1x768xf32, #tpu.memory_space<vmem>>, vector<1x128xf32>
      %c0_12 = arith.constant 0 : index
      %c0_13 = arith.constant 0 : index
      %12 = vector.load %arg4[%c0_12, %c0_13] : memref<1x768xf32, #tpu.memory_space<vmem>>, vector<1x128xf32>
      %13 = vector.broadcast %11 : vector<1x128xf32> to vector<8x128xf32>
      %14 = arith.subf %10, %13 : vector<8x128xf32>
      %cst_14 = arith.constant 0.000000e+00 : f32
      %15 = vector.broadcast %cst_14 : f32 to vector<8x128xf32>
      %16 = arith.maximumf %14, %15 : vector<8x128xf32>
      %17 = vector.broadcast %12 : vector<1x128xf32> to vector<8x128xf32>
      %18 = arith.subf %17, %10 : vector<8x128xf32>
      %cst_15 = arith.constant 0.000000e+00 : f32
      %19 = vector.broadcast %cst_15 : f32 to vector<8x128xf32>
      %20 = arith.maximumf %18, %19 : vector<8x128xf32>
      %21 = arith.mulf %16, %20 : vector<8x128xf32>
      %22 = arith.mulf %21, %21 : vector<8x128xf32>
      %c0_16 = arith.constant 0 : index
      %c0_17 = arith.constant 0 : index
      %23 = vector.load %arg8[%c0_16, %c0_17] : memref<8x768xf32, #tpu.memory_space<vmem>>, vector<8x128xf32>
      tpu.vector_store %arg8[%c0_16, %c0_17], %22 {strides = array<i32>} : memref<8x768xf32, #tpu.memory_space<vmem>>, vector<8x128xf32>,
      %c0_18 = arith.constant 0 : index
      %c128 = arith.constant 128 : index
      %24 = vector.load %arg3[%c0_18, %c128] : memref<1x768xf32, #tpu.memory_space<vmem>>, vector<1x128xf32>
      %c0_19 = arith.constant 0 : index
      %c128_20 = arith.constant 128 : index
      %25 = vector.load %arg4[%c0_19, %c128_20] : memref<1x768xf32, #tpu.memory_space<vmem>>, vector<1x128xf32>
      %26 = vector.broadcast %24 : vector<1x128xf32> to vector<8x128xf32>
      %27 = arith.subf %10, %26 : vector<8x128xf32>
      %cst_21 = arith.constant 0.000000e+00 : f32
      %28 = vector.broadcast %cst_21 : f32 to vector<8x128xf32>
      %29 = arith.maximumf %27, %28 : vector<8x128xf32>
      %30 = vector.broadcast %25 : vector<1x128xf32> to vector<8x128xf32>
      %31 = arith.subf %30, %10 : vector<8x128xf32>
      %cst_22 = arith.constant 0.000000e+00 : f32
      %32 = vector.broadcast %cst_22 : f32 to vector<8x128xf32>
      %33 = arith.maximumf %31, %32 : vector<8x128xf32>
      %34 = arith.mulf %29, %33 : vector<8x128xf32>
      %35 = arith.mulf %34, %34 : vector<8x128xf32>
      %c0_23 = arith.constant 0 : index
      %c128_24 = arith.constant 128 : index
      %36 = vector.load %arg8[%c0_23, %c128_24] : memref<8x768xf32, #tpu.memory_space<vmem>>, vector<8x128xf32>
      tpu.vector_store %arg8[%c0_23, %c128_24], %35 {strides = array<i32>} : memref<8x768xf32, #tpu.memory_space<vmem>>, vector<8x128xf32>,
      %c0_25 = arith.constant 0 : index
      %c256 = arith.constant 256 : index
      %37 = vector.load %arg3[%c0_25, %c256] : memref<1x768xf32, #tpu.memory_space<vmem>>, vector<1x128xf32>
      %c0_26 = arith.constant 0 : index
      %c256_27 = arith.constant 256 : index
      %38 = vector.load %arg4[%c0_26, %c256_27] : memref<1x768xf32, #tpu.memory_space<vmem>>, vector<1x128xf32>
      %39 = vector.broadcast %37 : vector<1x128xf32> to vector<8x128xf32>
      %40 = arith.subf %10, %39 : vector<8x128xf32>
      %cst_28 = arith.constant 0.000000e+00 : f32
      %41 = vector.broadcast %cst_28 : f32 to vector<8x128xf32>
      %42 = arith.maximumf %40, %41 : vector<8x128xf32>
      %43 = vector.broadcast %38 : vector<1x128xf32> to vector<8x128xf32>
      %44 = arith.subf %43, %10 : vector<8x128xf32>
      %cst_29 = arith.constant 0.000000e+00 : f32
      %45 = vector.broadcast %cst_29 : f32 to vector<8x128xf32>
      %46 = arith.maximumf %44, %45 : vector<8x128xf32>
      %47 = arith.mulf %42, %46 : vector<8x128xf32>
      %48 = arith.mulf %47, %47 : vector<8x128xf32>
      %c0_30 = arith.constant 0 : index
      %c256_31 = arith.constant 256 : index
      %49 = vector.load %arg8[%c0_30, %c256_31] : memref<8x768xf32, #tpu.memory_space<vmem>>, vector<8x128xf32>
      tpu.vector_store %arg8[%c0_30, %c256_31], %48 {strides = array<i32>} : memref<8x768xf32, #tpu.memory_space<vmem>>, vector<8x128xf32>,
      %c0_32 = arith.constant 0 : index
      %c384 = arith.constant 384 : index
      %50 = vector.load %arg3[%c0_32, %c384] : memref<1x768xf32, #tpu.memory_space<vmem>>, vector<1x128xf32>
      %c0_33 = arith.constant 0 : index
      %c384_34 = arith.constant 384 : index
      %51 = vector.load %arg4[%c0_33, %c384_34] : memref<1x768xf32, #tpu.memory_space<vmem>>, vector<1x128xf32>
      %52 = vector.broadcast %50 : vector<1x128xf32> to vector<8x128xf32>
      %53 = arith.subf %10, %52 : vector<8x128xf32>
      %cst_35 = arith.constant 0.000000e+00 : f32
      %54 = vector.broadcast %cst_35 : f32 to vector<8x128xf32>
      %55 = arith.maximumf %53, %54 : vector<8x128xf32>
      %56 = vector.broadcast %51 : vector<1x128xf32> to vector<8x128xf32>
      %57 = arith.subf %56, %10 : vector<8x128xf32>
      %cst_36 = arith.constant 0.000000e+00 : f32
      %58 = vector.broadcast %cst_36 : f32 to vector<8x128xf32>
      %59 = arith.maximumf %57, %58 : vector<8x128xf32>
      %60 = arith.mulf %55, %59 : vector<8x128xf32>
      %61 = arith.mulf %60, %60 : vector<8x128xf32>
      %c0_37 = arith.constant 0 : index
      %c384_38 = arith.constant 384 : index
      %62 = vector.load %arg8[%c0_37, %c384_38] : memref<8x768xf32, #tpu.memory_space<vmem>>, vector<8x128xf32>
      tpu.vector_store %arg8[%c0_37, %c384_38], %61 {strides = array<i32>} : memref<8x768xf32, #tpu.memory_space<vmem>>, vector<8x128xf32>,
      %c0_39 = arith.constant 0 : index
      %c512 = arith.constant 512 : index
      %63 = vector.load %arg3[%c0_39, %c512] : memref<1x768xf32, #tpu.memory_space<vmem>>, vector<1x128xf32>
      %c0_40 = arith.constant 0 : index
      %c512_41 = arith.constant 512 : index
      %64 = vector.load %arg4[%c0_40, %c512_41] : memref<1x768xf32, #tpu.memory_space<vmem>>, vector<1x128xf32>
      %65 = vector.broadcast %63 : vector<1x128xf32> to vector<8x128xf32>
      %66 = arith.subf %10, %65 : vector<8x128xf32>
      %cst_42 = arith.constant 0.000000e+00 : f32
      %67 = vector.broadcast %cst_42 : f32 to vector<8x128xf32>
      %68 = arith.maximumf %66, %67 : vector<8x128xf32>
      %69 = vector.broadcast %64 : vector<1x128xf32> to vector<8x128xf32>
      %70 = arith.subf %69, %10 : vector<8x128xf32>
      %cst_43 = arith.constant 0.000000e+00 : f32
      %71 = vector.broadcast %cst_43 : f32 to vector<8x128xf32>
      %72 = arith.maximumf %70, %71 : vector<8x128xf32>
      %73 = arith.mulf %68, %72 : vector<8x128xf32>
      %74 = arith.mulf %73, %73 : vector<8x128xf32>
      %c0_44 = arith.constant 0 : index
      %c512_45 = arith.constant 512 : index
      %75 = vector.load %arg8[%c0_44, %c512_45] : memref<8x768xf32, #tpu.memory_space<vmem>>, vector<8x128xf32>
      tpu.vector_store %arg8[%c0_44, %c512_45], %74 {strides = array<i32>} : memref<8x768xf32, #tpu.memory_space<vmem>>, vector<8x128xf32>,
      %c0_46 = arith.constant 0 : index
      %c640 = arith.constant 640 : index
      %76 = vector.load %arg3[%c0_46, %c640] : memref<1x768xf32, #tpu.memory_space<vmem>>, vector<1x128xf32>
      %c0_47 = arith.constant 0 : index
      %c640_48 = arith.constant 640 : index
      %77 = vector.load %arg4[%c0_47, %c640_48] : memref<1x768xf32, #tpu.memory_space<vmem>>, vector<1x128xf32>
      %78 = vector.broadcast %76 : vector<1x128xf32> to vector<8x128xf32>
      %79 = arith.subf %10, %78 : vector<8x128xf32>
      %cst_49 = arith.constant 0.000000e+00 : f32
      %80 = vector.broadcast %cst_49 : f32 to vector<8x128xf32>
      %81 = arith.maximumf %79, %80 : vector<8x128xf32>
      %82 = vector.broadcast %77 : vector<1x128xf32> to vector<8x128xf32>
      %83 = arith.subf %82, %10 : vector<8x128xf32>
      %cst_50 = arith.constant 0.000000e+00 : f32
      %84 = vector.broadcast %cst_50 : f32 to vector<8x128xf32>
      %85 = arith.maximumf %83, %84 : vector<8x128xf32>
      %86 = arith.mulf %81, %85 : vector<8x128xf32>
      %87 = arith.mulf %86, %86 : vector<8x128xf32>
      %c0_51 = arith.constant 0 : index
      %c640_52 = arith.constant 640 : index
      %88 = vector.load %arg8[%c0_51, %c640_52] : memref<8x768xf32, #tpu.memory_space<vmem>>, vector<8x128xf32>
      tpu.vector_store %arg8[%c0_51, %c640_52], %87 {strides = array<i32>} : memref<8x768xf32, #tpu.memory_space<vmem>>, vector<8x128xf32>,
    } else {
    }
    %c0 = arith.constant 0 : index
    %c0_1 = arith.constant 0 : index
    %3 = vector.load %arg8[%c0, %c0_1] : memref<8x768xf32, #tpu.memory_space<vmem>>, vector<8x768xf32>
    %c0_2 = arith.constant 0 : index
    %c0_3 = arith.constant 0 : index
    %4 = vector.load %arg5[%c0_2, %c0_3] : memref<768x128xf32, #tpu.memory_space<vmem>>, vector<768x128xf32>
    %cst = arith.constant dense<0.000000e+00> : vector<8x128xf32>
    %5 = tpu.matmul %3, %4, %cst {dimension_numbers = #tpu.dot_dimension_numbers<[1], [0], [0], [1], [0, 0, 1, 1], [], []>} : vector<8x768xf32>, vector<768x128xf32>, vector<8x128xf32> -> vector<8x128xf32>
    %c0_4 = arith.constant 0 : index
    %c0_5 = arith.constant 0 : index
    %6 = vector.load %arg6[%c0_4, %c0_5] : memref<1x128xf32, #tpu.memory_space<vmem>>, vector<1x128xf32>
    %7 = vector.broadcast %6 : vector<1x128xf32> to vector<8x128xf32>
    %8 = arith.addf %5, %7 : vector<8x128xf32>
    %c0_6 = arith.constant 0 : index
    %c0_7 = arith.constant 0 : index
    %9 = vector.load %arg7[%c0_6, %c0_7] : memref<8x128xf32, #tpu.memory_space<vmem>>, vector<8x128xf32>
    tpu.vector_store %arg7[%c0_6, %c0_7], %8 {strides = array<i32>} : memref<8x128xf32, #tpu.memory_space<vmem>>, vector<8x128xf32>,
    return
  }
  func.func @transform_0(%arg0: i32, %arg1: i32) -> (i32, i32) {
    %c0_i32 = arith.constant 0 : i32
    %c0_i32_0 = arith.constant 0 : i32
    return %arg0, %c0_i32 : i32, i32
  }
  func.func @transform_1(%arg0: i32, %arg1: i32) -> (i32, i32) {
    %c0_i32 = arith.constant 0 : i32
    %c0_i32_0 = arith.constant 0 : i32
    %c0_i32_1 = arith.constant 0 : i32
    return %c0_i32, %c0_i32_0 : i32, i32
  }
  func.func @transform_2(%arg0: i32, %arg1: i32) -> (i32, i32) {
    %c0_i32 = arith.constant 0 : i32
    %c0_i32_0 = arith.constant 0 : i32
    %c0_i32_1 = arith.constant 0 : i32
    return %c0_i32, %c0_i32_0 : i32, i32
  }
  func.func @transform_3(%arg0: i32, %arg1: i32) -> (i32, i32) {
    %c0_i32 = arith.constant 0 : i32
    %c0_i32_0 = arith.constant 0 : i32
    return %c0_i32, %arg1 : i32, i32
  }
  func.func @transform_4(%arg0: i32, %arg1: i32) -> (i32, i32) {
    %c0_i32 = arith.constant 0 : i32
    %c0_i32_0 = arith.constant 0 : i32
    return %c0_i32, %arg1 : i32, i32
  }
  func.func @transform_5(%arg0: i32, %arg1: i32) -> (i32, i32) {
    %c0_i32 = arith.constant 0 : i32
    return %arg0, %arg1 : i32, i32
  }
}

</mosaic_0001>

<bundles_post_ra>
// kernel: tpu_custom_call.1
= control target key start
LH: loop header
LB: loop body
LE: loop exit
PB: predicated region body
PF: predicated region fallthrough
CT: control target
= control target key end

     0   :  { %10 = vsyncpa [#allocation4], 0  ;;  %s958_s0 = inlined_call_operand.hbm [shape: f32[8,128], index: 0, kind: input, shape index: {}]   ;;  %s959_s1 = inlined_call_operand.hbm [shape: f32[1,768], index: 1, kind: input, shape index: {}]   ;;  %s960_s2 = inlined_call_operand.vmem [shape: f32[1,768], index: 2, kind: input, shape index: {}]   ;;  %s961_s3 = inlined_call_operand.hbm [shape: f32[768,128], index: 3, kind: input, shape index: {}]   ;;  %s962_s4 = inlined_call_operand.vmem [shape: f32[1,128], index: 4, kind: input, shape index: {}]   ;;  %s963_s5 = inlined_call_operand.hbm [shape: f32[8,128], index: 5, kind: output, shape index: {}]  }
   0x1   :  { %11 = vsyncpa [#allocation7], 0 }
   0x2   :  { %12 = vsyncpa [#allocation5], 0  ;;  %s839_s18 = smov [#allocation6]   ;;  %s840_s20 = smov [#allocation3]  }
   0x3   :  { %s29_s19 = sshll.u32 %s839_s18, 4  ;;  %s19_s21 = sshll.u32 %s840_s20, 4  ;;  %s30_s19 = int_to_ptr.vmem [resolvable:$true] %s29_s19  ;;  %s20_s21 = int_to_ptr.vmem [resolvable:$true] %s19_s21 }
   0x4   :  { %s745_s24 = scalar_lea.hbm %s959_s1, 96 }
   0x5   :  { %p746_p0 = scmp.ne.s32.totalorder %s959_s1, %s745_s24  ;;  %p749_p1 = scmp.lt.u32.totalorder %s745_s24, %s959_s1 }
   0x7   :  { %p751_p2 = pnand %p749_p1, %p746_p0 }
   0x9   :  { %754 = shalt.err (!%p751_p2)
}
   0xa   :  { %s755_s29 = scalar_lea.vmem %s30_s19, 96  ;;  %p760_p4 = scmp.lt.s32.totalorder %s30_s19, %s30_s19 }
   0xb   :  { %p756_p3 = scmp.ne.s32.totalorder %s30_s19, %s755_s29  ;;  %p761_p5 = scmp.lt.s32.totalorder %s755_s29, %s755_s29 }
   0xd   :  { %p762_p6 = por %p761_p5, %p760_p4 }
   0xf   :  { %p763_p7 = pnand %p762_p6, %p756_p3 }
  0x11   :  { %766 = shalt.err (!%p763_p7)
}
  0x12   :  { %32 = dma.hbm_to_vmem [thread:$0]  %s959_s1, 96, %s30_s19, [#allocation7]  }
  0x13   :  { %s767_s9 = scalar_lea.hbm %s958_s0, 128 }
  0x14   :  { %p768_p8 = scmp.ne.s32.totalorder %s958_s0, %s767_s9  ;;  %p771_p9 = scmp.lt.u32.totalorder %s767_s9, %s958_s0 }
  0x16   :  { %p773_p10 = pnand %p771_p9, %p768_p8 }
  0x18   :  { %776 = shalt.err (!%p773_p10)
}
  0x19   :  { %s777_s14 = scalar_lea.vmem %s20_s21, 128  ;;  %p782_p12 = scmp.lt.s32.totalorder %s20_s21, %s20_s21 }
  0x1a   :  { %p778_p11 = scmp.ne.s32.totalorder %s20_s21, %s777_s14  ;;  %p783_p13 = scmp.lt.s32.totalorder %s777_s14, %s777_s14 }
  0x1c   :  { %p784_p0 = por %p783_p13, %p782_p12 }
  0x1e   :  { %p785_p1 = pnand %p784_p0, %p778_p11 }
  0x20   :  { %788 = shalt.err (!%p785_p1)
}
  0x21   :  { %22 = dma.hbm_to_vmem [thread:$0]  %s958_s0, 128, %s20_s21, [#allocation4]  }
  0x22   :  { %s841_s16 = smov [#allocation8]   ;;  %s789_s20 = scalar_lea.hbm %s961_s3, 12288 }
  0x23   :  { %s40_s17 = sshll.u32 %s841_s16, 4  ;;  %p790_p2 = scmp.ne.s32.totalorder %s961_s3, %s789_s20  ;;  %s41_s17 = int_to_ptr.vmem [resolvable:$true] %s40_s17 }
  0x24   :  { %p793_p3 = scmp.lt.u32.totalorder %s789_s20, %s961_s3 }
  0x26   :  { %p795_p4 = pnand %p793_p3, %p790_p2 }
  0x28   :  { %798 = shalt.err (!%p795_p4)
}
  0x29   :  { %s799_s26 = scalar_lea.vmem %s41_s17, 12288  ;;  %p804_p6 = scmp.lt.s32.totalorder %s41_s17, %s41_s17 }
  0x2a   :  { %p800_p5 = scmp.ne.s32.totalorder %s41_s17, %s799_s26  ;;  %p805_p7 = scmp.lt.s32.totalorder %s799_s26, %s799_s26 }
  0x2c   :  { %p806_p8 = por %p805_p7, %p804_p6 }
  0x2e   :  { %p807_p9 = pnand %p806_p8, %p800_p5 }
  0x30   :  { %810 = shalt.err (!%p807_p9)
}
  0x31   :  { %s842_s0 = smov 128   ;;  %s843_s21 = smov 8  }
  0x32   :  { %46 = dma.hbm_to_vmem [thread:$0]  %s961_s3, 12288, %s41_s17, [#allocation7], %s842_s0, %s842_s0, %s843_s21  }
  0x33   :  { %833 = dma.done.wait [#allocation4], 128  }
  0x34   :  { %834 = vsyncadd [#allocation4], 4294967168 }
  0x35   :  { %835 = dma.done.wait [#allocation7], 12384  }
  0x36   :  { %836 = vsyncadd [#allocation7], 4294954912  ;;  %v211_v0 = vld [vmem:[#allocation8 + $0x80] sm:$0xff]  ;;  %v212_v1 = vld [vmem:[#allocation8 + $0x88] sm:$0xff]  ;;  %s844_s15 = smov [#allocation9]  }
  0x37   :  { %v195_v2 = vld [vmem:[#allocation8] sm:$0xff]  ;;  %v643_v3 = vpack.c.bf16 %v212_v1, %v211_v0  ;;  %v196_v4 = vld [vmem:[#allocation8 + $0x8] sm:$0xff]  ;;  %v213_v11 = vld [vmem:[#allocation8 + $0x90] sm:$0xff]  ;;  %s515_s16 = sshll.u32 %s844_s15, 4  ;;  %s516_s16 = int_to_ptr.vmem [resolvable:$true] %s515_s16 }
  0x38   :  { %v243_v5 = vld [vmem:[#allocation8 + $0x180] sm:$0xff]  ;;  %v244_v6 = vld [vmem:[#allocation8 + $0x188] sm:$0xff]  ;;  %v645_v7 = vpack.c.bf16 %v196_v4, %v195_v2  ;;  %v214_v13 = vld [vmem:[#allocation8 + $0x98] sm:$0xff]  ;;  %s811_s17 = scalar_lea.vmem %s516_s16, 128  ;;  %p816_p11 = scmp.lt.s32.totalorder %s516_s16, %s516_s16 }
  0x39   :  { %v675_v8 = vpack.c.bf16 %v244_v6, %v243_v5  ;;  %v227_v9 = vld [vmem:[#allocation8 + $0x100] sm:$0xff]  ;;  %v228_v10 = vld [vmem:[#allocation8 + $0x108] sm:$0xff]  ;;  %644 = vmatprep.subr.bf16.mxu0 %v643_v3  ;;  %v197_v14 = vld [vmem:[#allocation8 + $0x10] sm:$0xff]  ;;  %v647_v16 = vpack.c.bf16 %v214_v13, %v213_v11  ;;  %p812_p10 = scmp.ne.s32.totalorder %s516_s16, %s811_s17  ;;  %p817_p12 = scmp.lt.s32.totalorder %s811_s17, %s811_s17 }
  0x3a   :  { %v677_v12 = vpack.c.bf16 %v228_v10, %v227_v9  ;;  %v198_v15 = vld [vmem:[#allocation8 + $0x18] sm:$0xff]  ;;  %646 = vmatpush3.bf16.msra.mxu0 %v645_v7  ;;  %v245_v18 = vld [vmem:[#allocation8 + $0x190] sm:$0xff]  ;;  %v215_v23 = vld [vmem:[#allocation8 + $0xa0] sm:$0xff] }
  0x3b   :  { %676 = vmatprep.subr.bf16.mxu1 %v675_v8  ;;  %v649_v17 = vpack.c.bf16 %v198_v15, %v197_v14  ;;  %v246_v19 = vld [vmem:[#allocation8 + $0x198] sm:$0xff]  ;;  %v229_v20 = vld [vmem:[#allocation8 + $0x110] sm:$0xff]  ;;  %v216_v24 = vld [vmem:[#allocation8 + $0xa8] sm:$0xff]  ;;  %648 = vmatprep.subr.bf16.mxu0 %v647_v16  ;;  %p818_p13 = por %p817_p12, %p816_p11 }
  0x3c   :  { %678 = vmatpush3.bf16.msra.mxu1 %v677_v12  ;;  %v679_v21 = vpack.c.bf16 %v246_v19, %v245_v18  ;;  %v230_v22 = vld [vmem:[#allocation8 + $0x118] sm:$0xff]  ;;  %v651_v26 = vpack.c.bf16 %v216_v24, %v215_v23  ;;  %v199_v27 = vld [vmem:[#allocation8 + $0x20] sm:$0xff]  ;;  %v200_v28 = vld [vmem:[#allocation8 + $0x28] sm:$0xff] }
  0x3d   :  { %v681_v25 = vpack.c.bf16 %v230_v22, %v229_v20  ;;  %v247_v29 = vld [vmem:[#allocation8 + $0x1a0] sm:$0xff]  ;;  %v248_v30 = vld [vmem:[#allocation8 + $0x1a8] sm:$0xff]  ;;  %v653_v33 = vpack.c.bf16 %v200_v28, %v199_v27  ;;  %v217_v35 = vld [vmem:[#allocation8 + $0xb0] sm:$0xff]  ;;  %p819_p0 = pnand %p818_p13, %p812_p10 }
  0x3e   :  { %680 = vmatprep.subr.bf16.mxu1 %v679_v21  ;;  %v231_v31 = vld [vmem:[#allocation8 + $0x120] sm:$0xff]  ;;  %v232_v32 = vld [vmem:[#allocation8 + $0x128] sm:$0xff]  ;;  %650 = vmatpush3.bf16.msra.mxu0 %v649_v17  ;;  %v683_v34 = vpack.c.bf16 %v248_v30, %v247_v29  ;;  %v218_v36 = vld [vmem:[#allocation8 + $0xb8] sm:$0xff] }
  0x3f   :  { %v201_v37 = vld [vmem:[#allocation8 + $0x30] sm:$0xff]  ;;  %652 = vmatprep.subr.bf16.mxu0 %v651_v26  ;;  %v685_v38 = vpack.c.bf16 %v232_v32, %v231_v31  ;;  %v655_v39 = vpack.c.bf16 %v218_v36, %v217_v35  ;;  %v202_v40 = vld [vmem:[#allocation8 + $0x38] sm:$0xff]  ;;  %v219_v46 = vld [vmem:[#allocation8 + $0xc0] sm:$0xff] }
  0x40   :  { %682 = vmatpush3.bf16.msra.mxu1 %v681_v25  ;;  %v249_v41 = vld [vmem:[#allocation8 + $0x1b0] sm:$0xff]  ;;  %v250_v42 = vld [vmem:[#allocation8 + $0x1b8] sm:$0xff]  ;;  %v220_v47 = vld [vmem:[#allocation8 + $0xc8] sm:$0xff]  ;;  %v657_v48 = vpack.c.bf16 %v202_v40, %v201_v37 }
  0x41   :  { %684 = vmatprep.subr.bf16.mxu1 %v683_v34  ;;  %v687_v43 = vpack.c.bf16 %v250_v42, %v249_v41  ;;  %v233_v44 = vld [vmem:[#allocation8 + $0x130] sm:$0xff]  ;;  %v234_v45 = vld [vmem:[#allocation8 + $0x138] sm:$0xff]  ;;  %v251_v49 = vld [vmem:[#allocation8 + $0x1c0] sm:$0xff]  ;;  %v659_v52 = vpack.c.bf16 %v220_v47, %v219_v46 }
  0x42   :  { %654 = vmatpush3.bf16.msra.mxu0 %v653_v33  ;;  %v252_v50 = vld [vmem:[#allocation8 + $0x1c8] sm:$0xff]  ;;  %v689_v51 = vpack.c.bf16 %v234_v45, %v233_v44  ;;  %v203_v53 = vld [vmem:[#allocation8 + $0x40] sm:$0xff]  ;;  %v221_v58 = vld [vmem:[#allocation8 + $0xd0] sm:$0xff] }
  0x43   :  { %656 = vmatprep.subr.bf16.mxu0 %v655_v39  ;;  %v204_v54 = vld [vmem:[#allocation8 + $0x48] sm:$0xff]  ;;  %v235_v55 = vld [vmem:[#allocation8 + $0x140] sm:$0xff]  ;;  %v691_v56 = vpack.c.bf16 %v252_v50, %v251_v49  ;;  %v222_v59 = vld [vmem:[#allocation8 + $0xd8] sm:$0xff] }
  0x44   :  { %686 = vmatpush3.bf16.msra.mxu1 %v685_v38  ;;  %v236_v57 = vld [vmem:[#allocation8 + $0x148] sm:$0xff]  ;;  %v253_v60 = vld [vmem:[#allocation8 + $0x1d0] sm:$0xff]  ;;  %v254_v61 = vld [vmem:[#allocation8 + $0x1d8] sm:$0xff]  ;;  %v661_v62 = vpack.c.bf16 %v204_v54, %v203_v53  ;;  %v663_v3 = vpack.c.bf16 %v222_v59, %v221_v58 }
  0x45   :  { %688 = vmatprep.subr.bf16.mxu1 %v687_v43  ;;  %v205_v63 = vld [vmem:[#allocation8 + $0x50] sm:$0xff]  ;;  %v206_v0 = vld [vmem:[#allocation8 + $0x58] sm:$0xff]  ;;  %v693_v2 = vpack.c.bf16 %v236_v57, %v235_v55  ;;  %v223_v5 = vld [vmem:[#allocation8 + $0xe0] sm:$0xff]  ;;  %v695_v7 = vpack.c.bf16 %v254_v61, %v253_v60 }
  0x46   :  { %658 = vmatpush3.bf16.msra.mxu0 %v657_v48  ;;  %v237_v1 = vld [vmem:[#allocation8 + $0x150] sm:$0xff]  ;;  %v238_v4 = vld [vmem:[#allocation8 + $0x158] sm:$0xff]  ;;  %v224_v6 = vld [vmem:[#allocation8 + $0xe8] sm:$0xff]  ;;  %v665_v14 = vpack.c.bf16 %v206_v0, %v205_v63 }
  0x47   :  { %660 = vmatprep.subr.bf16.mxu0 %v659_v52  ;;  %v207_v8 = vld [vmem:[#allocation8 + $0x60] sm:$0xff]  ;;  %v208_v9 = vld [vmem:[#allocation8 + $0x68] sm:$0xff]  ;;  %v225_v15 = vld [vmem:[#allocation8 + $0xf0] sm:$0xff]  ;;  %v697_v18 = vpack.c.bf16 %v238_v4, %v237_v1  ;;  %v667_v19 = vpack.c.bf16 %v224_v6, %v223_v5 }
  0x48   :  { %690 = vmatpush3.bf16.msra.mxu1 %v689_v51  ;;  %v255_v10 = vld [vmem:[#allocation8 + $0x1e0] sm:$0xff]  ;;  %v256_v11 = vld [vmem:[#allocation8 + $0x1e8] sm:$0xff]  ;;  %v226_v16 = vld [vmem:[#allocation8 + $0xf8] sm:$0xff]  ;;  %v669_v29 = vpack.c.bf16 %v208_v9, %v207_v8 }
  0x49   :  { %692 = vmatprep.subr.bf16.mxu1 %v691_v56  ;;  %v239_v12 = vld [vmem:[#allocation8 + $0x160] sm:$0xff]  ;;  %v240_v13 = vld [vmem:[#allocation8 + $0x168] sm:$0xff]  ;;  %v911_v17 = vld [vmem:[#allocation3] sm:$0xff]  ;;  %v699_v23 = vpack.c.bf16 %v256_v11, %v255_v10  ;;  %v671_v35 = vpack.c.bf16 %v226_v16, %v225_v15 }
  0x4a   :  { %662 = vmatpush3.bf16.msra.mxu0 %v661_v62  ;;  %v257_v20 = vld [vmem:[#allocation8 + $0x1f0] sm:$0xff]  ;;  %v527_v21 = vld [vmem:[#allocation6 + $0x1] ss:$0 sm:$0xff]  ;;  %v525_v27 = vld [vmem:[#allocation6] ss:$0 sm:$0xff]  ;;  %v701_v30 = vpack.c.bf16 %v240_v13, %v239_v12 }
  0x4b   :  { %664 = vmatprep.subr.bf16.mxu0 %v663_v3  ;;  %v528_v22 = vld [vmem:[%s960_s2 + $0x1] ss:$0 sm:$0xff]  ;;  %v258_v24 = vld [vmem:[#allocation8 + $0x1f8] sm:$0xff]  ;;  %v92_v25 = vsub.f32 %v911_v17, %v527_v21  ;;  %v526_v28 = vld [vmem:[%s960_s2] ss:$0 sm:$0xff]  ;;  %v71_v32 = vsub.f32 %v911_v17, %v525_v27 }
  0x4c   :  { %694 = vmatpush3.bf16.msra.mxu1 %v693_v2  ;;  %v100_v26 = vsub.f32 %v528_v22, %v911_v17  ;;  %v209_v31 = vld [vmem:[#allocation8 + $0x70] sm:$0xff]  ;;  %v79_v33 = vsub.f32 %v526_v28, %v911_v17  ;;  %v531_v34 = vld [vmem:[#allocation6 + $0x3] ss:$0 sm:$0xff]  ;;  %v703_v42 = vpack.c.bf16 %v258_v24, %v257_v20  ;;  %v529_v46 = vld [vmem:[#allocation6 + $0x2] ss:$0 sm:$0xff] }
  0x4d   :  { %696 = vmatprep.subr.bf16.mxu1 %v695_v7  ;;  %v210_v36 = vld [vmem:[#allocation8 + $0x78] sm:$0xff]  ;;  %v93_v37 = vmax.f32 %v92_v25, 0.0  ;;  %v241_v39 = vld [vmem:[#allocation8 + $0x170] sm:$0xff]  ;;  %v134_v41 = vsub.f32 %v911_v17, %v531_v34  ;;  %v72_v43 = vmax.f32 %v71_v32, 0.0  ;;  %v275_v50 = vld [vmem:[#allocation8 + $0x280] sm:$0xff]  ;;  %v113_v53 = vsub.f32 %v911_v17, %v529_v46 }
  0x4e   :  { %666 = vmatpush3.bf16.msra.mxu0 %v665_v14  ;;  %v101_v38 = vmax.f32 %v100_v26, 0.0  ;;  %v532_v40 = vld [vmem:[%s960_s2 + $0x3] ss:$0 sm:$0xff]  ;;  %v80_v44 = vmax.f32 %v79_v33, 0.0  ;;  %v530_v47 = vld [vmem:[%s960_s2 + $0x2] ss:$0 sm:$0xff]  ;;  %v673_v57 = vpack.c.bf16 %v210_v36, %v209_v31 }
  0x4f   :  { %668 = vmatprep.subr.bf16.mxu0 %v667_v19  ;;  %v142_v45 = vsub.f32 %v532_v40, %v911_v17  ;;  %v242_v49 = vld [vmem:[#allocation8 + $0x178] sm:$0xff]  ;;  %v276_v51 = vld [vmem:[#allocation8 + $0x288] sm:$0xff]  ;;  %v135_v52 = vmax.f32 %v134_v41, 0.0  ;;  %v121_v54 = vsub.f32 %v530_v47, %v911_v17  ;;  %v114_v59 = vmax.f32 %v113_v53, 0.0  ;;  %v259_v0 = vld [vmem:[#allocation8 + $0x200] sm:$0xff] }
  0x50   :  { %698 = vmatpush3.bf16.msra.mxu1 %v697_v18  ;;  %v102_v48 = vmul.f32 %v101_v38, %v93_v37  ;;  %v81_v55 = vmul.f32 %v80_v44, %v72_v43  ;;  %v705_v61 = vpack.c.bf16 %v242_v49, %v241_v39  ;;  %v707_v62 = vpack.c.bf16 %v276_v51, %v275_v50  ;;  %v260_v1 = vld [vmem:[#allocation8 + $0x208] sm:$0xff]  ;;  %v277_v3 = vld [vmem:[#allocation8 + $0x290] sm:$0xff]  ;;  %v278_v4 = vld [vmem:[#allocation8 + $0x298] sm:$0xff] }
  0x51   :  { %700 = vmatprep.subr.bf16.mxu1 %v699_v23  ;;  %v143_v56 = vmax.f32 %v142_v45, 0.0  ;;  %v122_v60 = vmax.f32 %v121_v54, 0.0  ;;  %v709_v7 = vpack.c.bf16 %v260_v1, %v259_v0  ;;  %v711_v9 = vpack.c.bf16 %v278_v4, %v277_v3  ;;  %v261_v10 = vld [vmem:[#allocation8 + $0x210] sm:$0xff]  ;;  %v262_v11 = vld [vmem:[#allocation8 + $0x218] sm:$0xff]  ;;  %v279_v12 = vld [vmem:[#allocation8 + $0x2a0] sm:$0xff] }
  0x52   :  { %670 = vmatpush3.bf16.msra.mxu0 %v669_v29  ;;  %v103_v58 = vmul.f32 %v102_v48, %v102_v48  ;;  %v82_v5 = vmul.f32 %v81_v55, %v81_v55  ;;  %v280_v13 = vld [vmem:[#allocation8 + $0x2a8] sm:$0xff]  ;;  %v535_v14 = vld [vmem:[#allocation6 + $0x5] ss:$0 sm:$0xff]  ;;  %v536_v15 = vld [vmem:[%s960_s2 + $0x5] ss:$0 sm:$0xff]  ;;  %v713_v16 = vpack.c.bf16 %v262_v11, %v261_v10 }
  0x53   :  { %672 = vmatprep.subr.bf16.mxu0 %v671_v35  ;;  %v144_v63 = vmul.f32 %v143_v56, %v135_v52  ;;  %v123_v2 = vmul.f32 %v122_v60, %v114_v59  ;;  %v176_v18 = vsub.f32 %v911_v17, %v535_v14  ;;  %v184_v19 = vsub.f32 %v536_v15, %v911_v17  ;;  %v263_v21 = vld [vmem:[#allocation8 + $0x220] sm:$0xff]  ;;  %v264_v22 = vld [vmem:[#allocation8 + $0x228] sm:$0xff]  ;;  %v281_v23 = vld [vmem:[#allocation8 + $0x2b0] sm:$0xff] }
  0x54   :  { %702 = vmatpush3.bf16.msra.mxu1 %v701_v30  ;;  %362 = vmatprep.mubr.f32.mxu0 %v103_v58  ;;  %v715_v20 = vpack.c.bf16 %v280_v13, %v279_v12  ;;  %v282_v24 = vld [vmem:[#allocation8 + $0x2b8] sm:$0xff]  ;;  %v717_v27 = vpack.c.bf16 %v264_v22, %v263_v21  ;;  %v265_v30 = vld [vmem:[#allocation8 + $0x230] sm:$0xff]  ;;  %v283_v32 = vld [vmem:[#allocation8 + $0x2c0] sm:$0xff] }
  0x55   :  { %704 = vmatprep.subr.bf16.mxu1 %v703_v42  ;;  %v145_v6 = vmul.f32 %v144_v63, %v144_v63  ;;  %v124_v8 = vmul.f32 %v123_v2, %v123_v2  ;;  %v177_v25 = vmax.f32 %v176_v18, 0.0  ;;  %v185_v26 = vmax.f32 %v184_v19, 0.0  ;;  %v266_v31 = vld [vmem:[#allocation8 + $0x238] sm:$0xff]  ;;  %v284_v33 = vld [vmem:[#allocation8 + $0x2c8] sm:$0xff]  ;;  %v267_v37 = vld [vmem:[#allocation8 + $0x240] sm:$0xff] }
  0x56   :  { %674 = vmatpush3.bf16.msra.mxu0 %v673_v57  ;;  %v719_v29 = vpack.c.bf16 %v282_v24, %v281_v23  ;;  %v721_v35 = vpack.c.bf16 %v266_v31, %v265_v30  ;;  %v723_v36 = vpack.c.bf16 %v284_v33, %v283_v32  ;;  %v268_v38 = vld [vmem:[#allocation8 + $0x248] sm:$0xff]  ;;  %v285_v39 = vld [vmem:[#allocation8 + $0x2d0] sm:$0xff]  ;;  %v286_v40 = vld [vmem:[#allocation8 + $0x2d8] sm:$0xff] }
  0x57   :  { %708 = vmatprep.subr.bf16.mxu0 %v707_v62  ;;  %432 = vmatprep.mubr.f32.mxu1 %v145_v6  ;;  %v186_v28 = vmul.f32 %v185_v26, %v177_v25  ;;  %v725_v41 = vpack.c.bf16 %v268_v38, %v267_v37  ;;  %v533_v42 = vld [vmem:[#allocation6 + $0x4] ss:$0 sm:$0xff]  ;;  %v534_v43 = vld [vmem:[%s960_s2 + $0x4] ss:$0 sm:$0xff]  ;;  %v727_v44 = vpack.c.bf16 %v286_v40, %v285_v39  ;;  %v287_v47 = vld [vmem:[#allocation8 + $0x2e0] sm:$0xff] }
  0x58   :  { %706 = vmatpush3.bf16.msra.mxu1 %v705_v61  ;;  %v269_v45 = vld [vmem:[#allocation8 + $0x250] sm:$0xff]  ;;  %v270_v46 = vld [vmem:[#allocation8 + $0x258] sm:$0xff]  ;;  %v288_v48 = vld [vmem:[#allocation8 + $0x2e8] sm:$0xff]  ;;  %v155_v49 = vsub.f32 %v911_v17, %v533_v42  ;;  %v163_v50 = vsub.f32 %v534_v43, %v911_v17 }
  0x59   :  { %363 = vmatmul.mubr.f32.vlgmr.msra.gmra.mrb[0].mxu0 %v82_v5  ;;  %v187_v34 = vmul.f32 %v186_v28, %v186_v28  ;;  %v729_v51 = vpack.c.bf16 %v270_v46, %v269_v45  ;;  %v731_v52 = vpack.c.bf16 %v288_v48, %v287_v47  ;;  %v271_v53 = vld [vmem:[#allocation8 + $0x260] sm:$0xff]  ;;  %v272_v54 = vld [vmem:[#allocation8 + $0x268] sm:$0xff]  ;;  %v289_v55 = vld [vmem:[#allocation8 + $0x2f0] sm:$0xff] }
  0x5a   :  { %710 = vmatpush3.bf16.msra.mxu0 %v709_v7  ;;  %v290_v56 = vld [vmem:[#allocation8 + $0x2f8] sm:$0xff]  ;;  %v156_v57 = vmax.f32 %v155_v49, 0.0  ;;  %v164_v58 = vmax.f32 %v163_v50, 0.0  ;;  %v733_v59 = vpack.c.bf16 %v272_v54, %v271_v53  ;;  %v273_v61 = vld [vmem:[#allocation8 + $0x270] sm:$0xff] }
  0x5b   :  { %433 = vmatmul.mubr.f32.vlgmr.msra.gmra.mrb[0].mxu1 %v124_v8  ;;  %712 = vmatprep.subr.bf16.mxu0 %v711_v9  ;;  %v735_v60 = vpack.c.bf16 %v290_v56, %v289_v55  ;;  %v274_v62 = vld [vmem:[#allocation8 + $0x278] sm:$0xff]  ;;  %v537_v2 = vld [vmem:[%s962_s4] ss:$0 sm:$0xff] }
  0x5c   :  { %502 = vmatprep.mubr.f32.mxu0 %v187_v34  ;;  %v165_v63 = vmul.f32 %v164_v58, %v156_v57  ;;  %v737_v0 = vpack.c.bf16 %v274_v62, %v273_v61 }
  0x5e   :  { %714 = vmatpush3.bf16.msra.mxu0 %v713_v16  ;;  %v166_v17 = vmul.f32 %v165_v63, %v165_v63 }
  0x5f   :  { %716 = vmatprep.subr.bf16.mxu0 %v715_v20 }
  0x62   :  { %718 = vmatpush3.bf16.msra.mxu0 %v717_v27 }
  0x63   :  { %720 = vmatprep.subr.bf16.mxu0 %v719_v29 }
  0x66   :  { %722 = vmatpush3.bf16.msra.mxu0 %v721_v35 }
  0x67   :  { %724 = vmatprep.subr.bf16.mxu0 %v723_v36 }
  0x6a   :  { %726 = vmatpush3.bf16.msra.mxu0 %v725_v41 }
  0x6b   :  { %728 = vmatprep.subr.bf16.mxu0 %v727_v44 }
  0x6e   :  { %730 = vmatpush3.bf16.msra.mxu0 %v729_v51 }
  0x6f   :  { %732 = vmatprep.subr.bf16.mxu0 %v731_v52 }
  0x72   :  { %734 = vmatpush3.bf16.msra.mxu0 %v733_v59 }
  0x73   :  { %736 = vmatprep.subr.bf16.mxu0 %v735_v60 }
  0x76   :  { %738 = vmatpush3.bf16.msra.mxu0 %v737_v0 }
  0x79   :  { %503 = vmatmul.mubr.f32.vlgmr.msra.gmra.mrb[2].mxu0 %v166_v17 }
 0x12c   :  { %v570_v1 = vpop.f32.mrb[0].mxu0 }
 0x12d   :  { %v571_v3 = vpop.f32.mrb[1].mxu0 }
 0x12e   :  { %v605_v4 = vpop.f32.mrb[0].mxu1  ;;  %v572_v5 = vadd.f32 %v571_v3, %v570_v1 }
 0x12f   :  { %v606_v6 = vpop.f32.mrb[1].mxu1 }
 0x130   :  { %v607_v7 = vadd.f32 %v606_v6, %v605_v4  ;;  %v365_v8 = vadd.f32 %v572_v5, %v537_v2 }
 0x132   :  { %v435_v9 = vadd.f32 %v607_v7, %v365_v8 }
 0x14c   :  { %v640_v10 = vpop.f32.mrb[2].mxu0 }
 0x14d   :  { %v641_v11 = vpop.f32.mrb[3].mxu0 }
 0x14e   :  { %v642_v12 = vadd.f32 %v641_v11, %v640_v10 }
 0x150   :  { %v505_v13 = vadd.f32 %v642_v12, %v435_v9 }
 0x152   :  { %508 = vst [vmem:[#allocation9] sm:$0xff] %v505_v13 }
 0x153   :  { %822 = shalt.err (!%p819_p0)
}
 0x154   :  { %s823_s19 = scalar_lea.hbm %s963_s5, 128 }
 0x155   :  { %p824_p1 = scmp.ne.s32.totalorder %s963_s5, %s823_s19  ;;  %p827_p2 = scmp.lt.u32.totalorder %s823_s19, %s963_s5 }
 0x157   :  { %p829_p3 = pnand %p827_p2, %p824_p1 }
 0x159   :  { %832 = shalt.err (!%p829_p3)
}
 0x15a   :  { %518 = dma.vmem_to_hbm [thread:$0]  %s516_s16, 128, %s963_s5, [#allocation5]  }
 0x15b   :  { %837 = dma.done.wait [#allocation5], 128  }
 0x15c   :  { %838 = vsyncadd [#allocation5], 4294967168 }
 0x15d   :  { %522 = vsyncpa [#allocation4], 1 }
 0x15e   :  { %523 = vsyncpa [#allocation7], 1 }
 0x15f   :  { %524 = vsyncpa [#allocation5], 1 }

</bundles_post_ra>
